<compile_context>
chip_gen: v7x
topology: tpu7x:2x2x1
jax: 0.10.0
libtpu: 0.0.40
codegen_flags: <defaults>
</compile_context>

<pallas_src>
import math
import functools

import jax
import jax.numpy as jnp
from jax import lax
from jax.experimental import pallas as pl
from jax.experimental.pallas import tpu as pltpu


# ----------------------------- in-kernel math -----------------------------

def _layernorm(x, gamma, beta, eps=1e-5):
    mu = jnp.mean(x, axis=-1, keepdims=True)
    var = jnp.mean((x - mu) ** 2, axis=-1, keepdims=True)
    return (x - mu) * lax.rsqrt(var + eps) * gamma + beta


def _gelu_exact(x):
    # PyTorch nn.GELU() default = exact erf GELU (kept in f32; v5e has no bf16 EUP).
    return 0.5 * x * (1.0 + lax.erf(x * (1.0 / math.sqrt(2.0))))


# -------------------- kernel A: LN1 + per-head QKV projection --------------------

def _qkv_kernel(num_heads,
                x_ref, ln1_g, ln1_b, wq, bq, wk, bk, wv, bv,
                q_out, k_out, v_out):
    # x_ref block: (1, tq, d) bf16 — one batch element, one row tile.
    x = x_ref[0].astype(jnp.float32)                       # (tq, d)
    h = _layernorm(x, ln1_g[...], ln1_b[...])              # f32
    hb = h.astype(jnp.bfloat16)                            # bf16 MXU inputs

    for head in range(num_heads):                          # leading-axis weight indexing only
        q = jnp.dot(hb, wq[head], preferred_element_type=jnp.float32) + bq[head]
        k = jnp.dot(hb, wk[head], preferred_element_type=jnp.float32) + bk[head]
        v = jnp.dot(hb, wv[head], preferred_element_type=jnp.float32) + bv[head]
        q_out[0, head, :, :] = q.astype(q_out.dtype)
        k_out[0, head, :, :] = k.astype(k_out.dtype)
        v_out[0, head, :, :] = v.astype(v_out.dtype)


# ---------- kernel B: attention + folded out_proj + residual + LN2 + MLP ----------

def _attn_mlp_kernel(num_heads,
                     x_ref, q_ref, k_ref, v_ref,
                     w_out, b_out, ln2_g, ln2_b, w_fc, b_fc, w_pr, b_pr,
                     o_ref):
    x = x_ref[0].astype(jnp.float32)                       # (tq, d) residual stream, f32
    tq, d = x.shape

    # ---- attention: per head, out_proj folded into an f32 accumulator ----
    attn = jnp.zeros((tq, d), jnp.float32)
    for head in range(num_heads):
        q = q_ref[0, head]                                 # (tq, hd) bf16, pre-scaled
        k = k_ref[0, head]                                 # (s,  hd) bf16
        v = v_ref[0, head]                                 # (s,  hd) bf16
        # q @ k^T without materialising a transposed copy ("NT" matmul).
        scores = lax.dot_general(q, k, (((1,), (1,)), ((), ())),
                                 preferred_element_type=jnp.float32)   # (tq, s) f32
        m = jnp.max(scores, axis=-1, keepdims=True)
        e = jnp.exp(scores - m)
        p = e * pl.reciprocal(jnp.sum(e, axis=-1, keepdims=True), approx=True)
        ctx = jnp.dot(p.astype(jnp.bfloat16), v,
                      preferred_element_type=jnp.float32)              # (tq, hd)
        attn = attn + jnp.dot(ctx.astype(jnp.bfloat16), w_out[head],
                              preferred_element_type=jnp.float32)      # (tq, d)
    x = x + attn + b_out[...]                              # residual 1 (f32)

    # ---- MLP ----
    h2 = _layernorm(x, ln2_g[...], ln2_b[...])
    f = jnp.dot(h2.astype(jnp.bfloat16), w_fc[...],
                preferred_element_type=jnp.float32) + b_fc[...]
    f = _gelu_exact(f)                                     # f32
    mlp = jnp.dot(f.astype(jnp.bfloat16), w_pr[...],
                  preferred_element_type=jnp.float32) + b_pr[...]
    x = x + mlp                                            # residual 2 (f32)

    o_ref[0] = x.astype(o_ref.dtype)


# ----------------------------- pallas_call wrappers -----------------------------

def _full_spec(shape):
    nd = len(shape)
    return pl.BlockSpec(shape, lambda *_, _nd=nd: (0,) * _nd)


def _vmem_limit(resident_bytes):
    # resident set x2 (double-buffering) + headroom, clamped to what every chip has.
    need = 2 * resident_bytes + (8 << 20)
    return int(min(max(need, 32 << 20), 64 << 20))


def _run_qkv(x, p, num_heads, tq):
    b, s, d = x.shape
    hd = d // num_heads
    grid = (b, pl.cdiv(s, tq))

    weights = (p["ln1_g"], p["ln1_b"],
               p["wq"], p["bq"], p["wk"], p["bk"], p["wv"], p["bv"])

    x_spec = pl.BlockSpec((1, tq, d), lambda bi, si: (bi, si, 0))
    out_spec = pl.BlockSpec((1, num_heads, tq, hd), lambda bi, si: (bi, 0, si, 0))
    qkv_shape = jax.ShapeDtypeStruct((b, num_heads, s, hd), jnp.bfloat16)

    resident = (tq * d * x.dtype.itemsize
                + sum(int(w.size) * w.dtype.itemsize for w in weights)
                + 3 * num_heads * tq * hd * 2)

    return pl.pallas_call(
        functools.partial(_qkv_kernel, num_heads),
        out_shape=(qkv_shape, qkv_shape, qkv_shape),
        grid=grid,
        in_specs=[x_spec] + [_full_spec(w.shape) for w in weights],
        out_specs=(out_spec, out_spec, out_spec),
        compiler_params=pltpu.CompilerParams(
            dimension_semantics=("parallel", "parallel"),
            vmem_limit_bytes=_vmem_limit(resident)),
    )(x, *weights)


def _run_attn_mlp(x, q, k, v, p, num_heads, tq):
    b, s, d = x.shape
    hd = d // num_heads
    grid = (b, pl.cdiv(s, tq))

    weights = (p["w_out"], p["b_out"], p["ln2_g"], p["ln2_b"],
               p["w_fc"], p["b_fc"], p["w_pr"], p["b_pr"])

    x_spec = pl.BlockSpec((1, tq, d), lambda bi, si: (bi, si, 0))
    q_spec = pl.BlockSpec((1, num_heads, tq, hd), lambda bi, si: (bi, 0, si, 0))
    kv_spec = pl.BlockSpec((1, num_heads, s, hd), lambda bi, si: (bi, 0, 0, 0))
    out_spec = pl.BlockSpec((1, tq, d), lambda bi, si: (bi, si, 0))   # lane-dense: full d

    resident = (2 * tq * d * x.dtype.itemsize
                + num_heads * tq * hd * 2
                + 2 * num_heads * s * hd * 2
                + sum(int(w.size) * w.dtype.itemsize for w in weights))

    return pl.pallas_call(
        functools.partial(_attn_mlp_kernel, num_heads),
        out_shape=jax.ShapeDtypeStruct((b, s, d), x.dtype),
        grid=grid,
        in_specs=[x_spec, q_spec, kv_spec, kv_spec] + [_full_spec(w.shape) for w in weights],
        out_specs=out_spec,
        compiler_params=pltpu.CompilerParams(
            dimension_semantics=("parallel", "parallel"),
            vmem_limit_bytes=_vmem_limit(resident)),
    )(x, q, k, v, *weights)


def transformer_block_forward(x_sbd, packed_layer_params, num_heads, q_tile=128):
    """x_sbd: [seq, batch, width] (PyTorch convention). Returns same shape/dtype."""
    out_dtype = x_sbd.dtype
    x = jnp.transpose(x_sbd, (1, 0, 2)).astype(jnp.bfloat16)   # [b, s, d], bf16 in HBM
    b, s, d = x.shape
    tq = s if s <= q_tile else q_tile
    for p in packed_layer_params:
        q, k, v = _run_qkv(x, p, num_heads, tq)
        x = _run_attn_mlp(x, q, k, v, p, num_heads, tq)
    return jnp.transpose(x, (1, 0, 2)).astype(out_dtype)


# ----------------------------- parameter init & packing -----------------------------

def init_torch_style_params(key, width, layers, heads, mlp_ratio=4.0):
    """PyTorch-shaped (out_features, in_features) weights, 1-D biases / LN params."""
    del heads
    mlp_width = int(width * mlp_ratio)
    params = []
    for l in range(layers):
        k = jax.random.fold_in(key, l)
        k_in, k_out, k_fc, k_pr, kb_in, kb_out, kb_fc, kb_pr = jax.random.split(k, 8)
        params.append((
            jnp.ones((width,), jnp.float32),                                  # ln_1.weight
            jnp.zeros((width,), jnp.float32),                                 # ln_1.bias
            0.02 * jax.random.normal(k_in, (3 * width, width), jnp.float32),  # in_proj.weight
            0.01 * jax.random.normal(kb_in, (3 * width,), jnp.float32),       # in_proj.bias
            0.02 * jax.random.normal(k_out, (width, width), jnp.float32),     # out_proj.weight
            0.01 * jax.random.normal(kb_out, (width,), jnp.float32),          # out_proj.bias
            jnp.ones((width,), jnp.float32),                                  # ln_2.weight
            jnp.zeros((width,), jnp.float32),                                 # ln_2.bias
            0.02 * jax.random.normal(k_fc, (mlp_width, width), jnp.float32),  # mlp.c_fc.weight
            0.01 * jax.random.normal(kb_fc, (mlp_width,), jnp.float32),       # mlp.c_fc.bias
            0.02 * jax.random.normal(k_pr, (width, mlp_width), jnp.float32),  # mlp.c_proj.weight
            0.01 * jax.random.normal(kb_pr, (width,), jnp.float32),           # mlp.c_proj.bias
        ))
    return params


def pack_layer_params(raw, num_heads):
    """Kernel-side parameter layout.

    Qwen-VL's VisualAttention views the in_proj output as [.., H, 3*hd] and splits
    it, so the 3d axis is per-head interleaved [q_h | k_h | v_h] * H (NOT the
    nn.MultiheadAttention q-block|k-block|v-block layout). The stacking below makes
    that mapping explicit so real checkpoints loaded through this function stay correct.
    """
    (ln1_g, ln1_b, w_in, b_in, w_out, b_out,
     ln2_g, ln2_b, w_fc, b_fc, w_pr, b_pr) = raw
    d = w_out.shape[0]
    hd = d // num_heads
    scale = 1.0 / math.sqrt(hd)   # folded into W_q / b_q (torch: q / norm_factor)

    wq, wk, wv, bq, bk, bv = [], [], [], [], [], []
    for h in range(num_heads):
        base = h * 3 * hd
        rq = slice(base, base + hd)
        rk = slice(base + hd, base + 2 * hd)
        rv = slice(base + 2 * hd, base + 3 * hd)
        wq.append(w_in[rq, :].T * scale)                  # (d, hd)
        wk.append(w_in[rk, :].T)
        wv.append(w_in[rv, :].T)
        bq.append(b_in[rq].reshape(1, hd) * scale)
        bk.append(b_in[rk].reshape(1, hd))
        bv.append(b_in[rv].reshape(1, hd))

    return dict(
        ln1_g=ln1_g.reshape(1, d).astype(jnp.float32),
        ln1_b=ln1_b.reshape(1, d).astype(jnp.float32),
        wq=jnp.stack(wq).astype(jnp.bfloat16),            # (H, d, hd)
        wk=jnp.stack(wk).astype(jnp.bfloat16),
        wv=jnp.stack(wv).astype(jnp.bfloat16),
        bq=jnp.stack(bq).astype(jnp.float32),             # (H, 1, hd)
        bk=jnp.stack(bk).astype(jnp.float32),
        bv=jnp.stack(bv).astype(jnp.float32),
        # out_proj folded per head: attn = sum_h ctx_h @ w_out_h, w_out_h = W_out[:, cols_h].T
        w_out=jnp.stack([w_out[:, h * hd:(h + 1) * hd].T
                         for h in range(num_heads)]).astype(jnp.bfloat16),   # (H, hd, d)
        b_out=b_out.reshape(1, d).astype(jnp.float32),
        ln2_g=ln2_g.reshape(1, d).astype(jnp.float32),
        ln2_b=ln2_b.reshape(1, d).astype(jnp.float32),
        w_fc=w_fc.T.astype(jnp.bfloat16),                 # (d, mlp)
        b_fc=b_fc.reshape(1, -1).astype(jnp.float32),
        w_pr=w_pr.T.astype(jnp.bfloat16),                 # (mlp, d)
        b_pr=b_pr.reshape(1, -1).astype(jnp.float32),
    )


# ----------------------------- pure-JAX reference -----------------------------

def reference_forward(x_sbd, raw_layer_params, num_heads):
    """Mirrors the PyTorch module (bf16 activations at layer boundaries, f32 math)."""
    x = jnp.transpose(x_sbd, (1, 0, 2)).astype(jnp.bfloat16)    # (b, s, d)
    for raw in raw_layer_params:
        (ln1_g, ln1_b, w_in, b_in, w_out, b_out,
         ln2_g, ln2_b, w_fc, b_fc, w_pr, b_pr) = raw
        b, s, d = x.shape
        hd = d // num_heads
        xf = x.astype(jnp.float32)
        h = _layernorm(xf, ln1_g.reshape(1, d), ln1_b.reshape(1, d))
        qkv = (h @ w_in.T + b_in).reshape(b, s, num_heads, 3 * hd)
        q = qkv[..., :hd] / math.sqrt(hd)
        k = qkv[..., hd:2 * hd]
        v = qkv[..., 2 * hd:]
        p = jax.nn.softmax(jnp.einsum('bqhd,bkhd->bhqk', q, k), axis=-1)
        ctx = jnp.einsum('bhqk,bkhd->bqhd', p, v).reshape(b, s, d)
        xf = xf + ctx @ w_out.T + b_out
        h2 = _layernorm(xf, ln2_g.reshape(1, d), ln2_b.reshape(1, d))
        f = _gelu_exact(h2 @ w_fc.T + b_fc)
        xf = xf + f @ w_pr.T + b_pr
        x = xf.astype(jnp.bfloat16)
    return jnp.transpose(x, (1, 0, 2)).astype(x_sbd.dtype)


# ----------------------------- demo -----------------------------

if __name__ == "__main__":
    seq, batch, width, heads, layers = 8, 2, 32, 4, 2

    key = jax.random.PRNGKey(0)
    x = jax.random.normal(jax.random.fold_in(key, 123),
                          (seq, batch, width), jnp.float32)           # [s, b, h]
    raw_params = init_torch_style_params(jax.random.fold_in(key, 7),
                                         width, layers, heads)
    packed_params = [pack_layer_params(r, heads) for r in raw_params]

    y = transformer_block_forward(x, packed_params, heads)
    y = jax.block_until_ready(y)

    assert y.shape == (seq, batch, width)
    assert bool(jnp.all(jnp.isfinite(y)))

    y_ref = jax.block_until_ready(reference_forward(x, raw_params, heads))
    max_err = float(jnp.max(jnp.abs(y - y_ref)))
    assert max_err < 8e-2, f"kernel vs reference max abs err {max_err}"

    print("KERNEL_OK")
</pallas_src>

<mosaic_0001>
module attributes {stable_mosaic.version = 11 : i64} {
  func.func @_qkv_kernel(%arg0: i32, %arg1: i32, %arg2: memref<1x8x32xbf16, #tpu.memory_space<vmem>>, %arg3: memref<1x32xf32, #tpu.memory_space<vmem>>, %arg4: memref<1x32xf32, #tpu.memory_space<vmem>>, %arg5: memref<4x32x8xbf16, #tpu.memory_space<vmem>>, %arg6: memref<4x1x8xf32, #tpu.memory_space<vmem>>, %arg7: memref<4x32x8xbf16, #tpu.memory_space<vmem>>, %arg8: memref<4x1x8xf32, #tpu.memory_space<vmem>>, %arg9: memref<4x32x8xbf16, #tpu.memory_space<vmem>>, %arg10: memref<4x1x8xf32, #tpu.memory_space<vmem>>, %arg11: memref<1x4x8x8xbf16, #tpu.memory_space<vmem>>, %arg12: memref<1x4x8x8xbf16, #tpu.memory_space<vmem>>, %arg13: memref<1x4x8x8xbf16, #tpu.memory_space<vmem>>) attributes {dimension_semantics = [#tpu.dimension_semantics<parallel>, #tpu.dimension_semantics<parallel>], iteration_bounds = array<i64: 2, 1>, scalar_prefetch = 0 : i64, scratch_operands = 0 : i64, tpu.core_type = #tpu.core_type<tc>, window_params = [{transform_indices = @transform_0, window_bounds = array<i64: 1, 8, 32>}, {pipeline_mode = #tpu.pipeline_mode<synchronous>, transform_indices = @transform_1, window_bounds = array<i64: 1, 32>}, {pipeline_mode = #tpu.pipeline_mode<synchronous>, transform_indices = @transform_2, window_bounds = array<i64: 1, 32>}, {pipeline_mode = #tpu.pipeline_mode<synchronous>, transform_indices = @transform_3, window_bounds = array<i64: 4, 32, 8>}, {pipeline_mode = #tpu.pipeline_mode<synchronous>, transform_indices = @transform_4, window_bounds = array<i64: 4, 1, 8>}, {pipeline_mode = #tpu.pipeline_mode<synchronous>, transform_indices = @transform_5, window_bounds = array<i64: 4, 32, 8>}, {pipeline_mode = #tpu.pipeline_mode<synchronous>, transform_indices = @transform_6, window_bounds = array<i64: 4, 1, 8>}, {pipeline_mode = #tpu.pipeline_mode<synchronous>, transform_indices = @transform_7, window_bounds = array<i64: 4, 32, 8>}, {pipeline_mode = #tpu.pipeline_mode<synchronous>, transform_indices = @transform_8, window_bounds = array<i64: 4, 1, 8>}, {transform_indices = @transform_9, window_bounds = array<i64: 1, 4, 8, 8>}, {transform_indices = @transform_10, window_bounds = array<i64: 1, 4, 8, 8>}, {transform_indices = @transform_11, window_bounds = array<i64: 1, 4, 8, 8>}]} {
    %c0 = arith.constant 0 : index
    %c0_0 = arith.constant 0 : index
    %c0_1 = arith.constant 0 : index
    %0 = vector.load %arg2[%c0, %c0_0, %c0_1] : memref<1x8x32xbf16, #tpu.memory_space<vmem>>, vector<1x8x32xbf16>
    %1 = vector.shape_cast %0 : vector<1x8x32xbf16> to vector<8x32xbf16>
    %2 = arith.extf %1 : vector<8x32xbf16> to vector<8x32xf32>
    %c0_2 = arith.constant 0 : index
    %c0_3 = arith.constant 0 : index
    %3 = vector.load %arg3[%c0_2, %c0_3] : memref<1x32xf32, #tpu.memory_space<vmem>>, vector<1x32xf32>
    %c0_4 = arith.constant 0 : index
    %c0_5 = arith.constant 0 : index
    %4 = vector.load %arg4[%c0_4, %c0_5] : memref<1x32xf32, #tpu.memory_space<vmem>>, vector<1x32xf32>
    %cst = arith.constant dense<0.000000e+00> : vector<8xf32>
    %5 = vector.multi_reduction <add>, %2, %cst [1] : vector<8x32xf32> to vector<8xf32>
    %6 = vector.shape_cast %5 : vector<8xf32> to vector<8x1xf32>
    %cst_6 = arith.constant 3.200000e+01 : f32
    %7 = vector.broadcast %cst_6 : f32 to vector<8x1xf32>
    %8 = arith.divf %6, %7 : vector<8x1xf32>
    %9 = vector.broadcast %8 : vector<8x1xf32> to vector<8x32xf32>
    %10 = arith.subf %2, %9 : vector<8x32xf32>
    %11 = arith.mulf %10, %10 : vector<8x32xf32>
    %cst_7 = arith.constant dense<0.000000e+00> : vector<8xf32>
    %12 = vector.multi_reduction <add>, %11, %cst_7 [1] : vector<8x32xf32> to vector<8xf32>
    %13 = vector.shape_cast %12 : vector<8xf32> to vector<8x1xf32>
    %cst_8 = arith.constant 3.200000e+01 : f32
    %14 = vector.broadcast %cst_8 : f32 to vector<8x1xf32>
    %15 = arith.divf %13, %14 : vector<8x1xf32>
    %16 = vector.broadcast %8 : vector<8x1xf32> to vector<8x32xf32>
    %17 = arith.subf %2, %16 : vector<8x32xf32>
    %cst_9 = arith.constant 9.99999974E-6 : f32
    %18 = vector.broadcast %cst_9 : f32 to vector<8x1xf32>
    %19 = arith.addf %15, %18 : vector<8x1xf32>
    %20 = math.rsqrt %19 : vector<8x1xf32>
    %21 = vector.broadcast %20 : vector<8x1xf32> to vector<8x32xf32>
    %22 = arith.mulf %17, %21 : vector<8x32xf32>
    %23 = vector.broadcast %3 : vector<1x32xf32> to vector<8x32xf32>
    %24 = arith.mulf %22, %23 : vector<8x32xf32>
    %25 = vector.broadcast %4 : vector<1x32xf32> to vector<8x32xf32>
    %26 = arith.addf %24, %25 : vector<8x32xf32>
    %27 = arith.truncf %26 : vector<8x32xf32> to vector<8x32xbf16>
    %c0_10 = arith.constant 0 : index
    %c0_11 = arith.constant 0 : index
    %c0_12 = arith.constant 0 : index
    %28 = vector.load %arg5[%c0_10, %c0_11, %c0_12] : memref<4x32x8xbf16, #tpu.memory_space<vmem>>, vector<1x32x8xbf16>
    %29 = vector.shape_cast %28 : vector<1x32x8xbf16> to vector<32x8xbf16>
    %cst_13 = arith.constant dense<0.000000e+00> : vector<8x8xf32>
    %30 = tpu.matmul %27, %29, %cst_13 {dimension_numbers = #tpu.dot_dimension_numbers<[1], [0], [0], [1], [0, 0, 1, 1], [], []>} : vector<8x32xbf16>, vector<32x8xbf16>, vector<8x8xf32> -> vector<8x8xf32>
    %c0_14 = arith.constant 0 : index
    %c0_15 = arith.constant 0 : index
    %c0_16 = arith.constant 0 : index
    %31 = vector.load %arg6[%c0_14, %c0_15, %c0_16] : memref<4x1x8xf32, #tpu.memory_space<vmem>>, vector<1x1x8xf32>
    %32 = vector.shape_cast %31 : vector<1x1x8xf32> to vector<1x8xf32>
    %33 = vector.broadcast %32 : vector<1x8xf32> to vector<8x8xf32>
    %34 = arith.addf %30, %33 : vector<8x8xf32>
    %c0_17 = arith.constant 0 : index
    %c0_18 = arith.constant 0 : index
    %c0_19 = arith.constant 0 : index
    %35 = vector.load %arg7[%c0_17, %c0_18, %c0_19] : memref<4x32x8xbf16, #tpu.memory_space<vmem>>, vector<1x32x8xbf16>
    %36 = vector.shape_cast %35 : vector<1x32x8xbf16> to vector<32x8xbf16>
    %cst_20 = arith.constant dense<0.000000e+00> : vector<8x8xf32>
    %37 = tpu.matmul %27, %36, %cst_20 {dimension_numbers = #tpu.dot_dimension_numbers<[1], [0], [0], [1], [0, 0, 1, 1], [], []>} : vector<8x32xbf16>, vector<32x8xbf16>, vector<8x8xf32> -> vector<8x8xf32>
    %c0_21 = arith.constant 0 : index
    %c0_22 = arith.constant 0 : index
    %c0_23 = arith.constant 0 : index
    %38 = vector.load %arg8[%c0_21, %c0_22, %c0_23] : memref<4x1x8xf32, #tpu.memory_space<vmem>>, vector<1x1x8xf32>
    %39 = vector.shape_cast %38 : vector<1x1x8xf32> to vector<1x8xf32>
    %40 = vector.broadcast %39 : vector<1x8xf32> to vector<8x8xf32>
    %41 = arith.addf %37, %40 : vector<8x8xf32>
    %c0_24 = arith.constant 0 : index
    %c0_25 = arith.constant 0 : index
    %c0_26 = arith.constant 0 : index
    %42 = vector.load %arg9[%c0_24, %c0_25, %c0_26] : memref<4x32x8xbf16, #tpu.memory_space<vmem>>, vector<1x32x8xbf16>
    %43 = vector.shape_cast %42 : vector<1x32x8xbf16> to vector<32x8xbf16>
    %cst_27 = arith.constant dense<0.000000e+00> : vector<8x8xf32>
    %44 = tpu.matmul %27, %43, %cst_27 {dimension_numbers = #tpu.dot_dimension_numbers<[1], [0], [0], [1], [0, 0, 1, 1], [], []>} : vector<8x32xbf16>, vector<32x8xbf16>, vector<8x8xf32> -> vector<8x8xf32>
    %c0_28 = arith.constant 0 : index
    %c0_29 = arith.constant 0 : index
    %c0_30 = arith.constant 0 : index
    %45 = vector.load %arg10[%c0_28, %c0_29, %c0_30] : memref<4x1x8xf32, #tpu.memory_space<vmem>>, vector<1x1x8xf32>
    %46 = vector.shape_cast %45 : vector<1x1x8xf32> to vector<1x8xf32>
    %47 = vector.broadcast %46 : vector<1x8xf32> to vector<8x8xf32>
    %48 = arith.addf %44, %47 : vector<8x8xf32>
    %49 = arith.truncf %34 : vector<8x8xf32> to vector<8x8xbf16>
    %c0_31 = arith.constant 0 : index
    %c0_32 = arith.constant 0 : index
    %c0_33 = arith.constant 0 : index
    %c0_34 = arith.constant 0 : index
    %50 = vector.load %arg11[%c0_31, %c0_32, %c0_33, %c0_34] : memref<1x4x8x8xbf16, #tpu.memory_space<vmem>>, vector<1x1x8x8xbf16>
    %51 = vector.shape_cast %50 : vector<1x1x8x8xbf16> to vector<8x8xbf16>
    %52 = vector.shape_cast %49 : vector<8x8xbf16> to vector<1x1x8x8xbf16>
    tpu.vector_store %arg11[%c0_31, %c0_32, %c0_33, %c0_34], %52 {strides = array<i32>} : memref<1x4x8x8xbf16, #tpu.memory_space<vmem>>, vector<1x1x8x8xbf16>,
    %53 = arith.truncf %41 : vector<8x8xf32> to vector<8x8xbf16>
    %c0_35 = arith.constant 0 : index
    %c0_36 = arith.constant 0 : index
    %c0_37 = arith.constant 0 : index
    %c0_38 = arith.constant 0 : index
    %54 = vector.load %arg12[%c0_35, %c0_36, %c0_37, %c0_38] : memref<1x4x8x8xbf16, #tpu.memory_space<vmem>>, vector<1x1x8x8xbf16>
    %55 = vector.shape_cast %54 : vector<1x1x8x8xbf16> to vector<8x8xbf16>
    %56 = vector.shape_cast %53 : vector<8x8xbf16> to vector<1x1x8x8xbf16>
    tpu.vector_store %arg12[%c0_35, %c0_36, %c0_37, %c0_38], %56 {strides = array<i32>} : memref<1x4x8x8xbf16, #tpu.memory_space<vmem>>, vector<1x1x8x8xbf16>,
    %57 = arith.truncf %48 : vector<8x8xf32> to vector<8x8xbf16>
    %c0_39 = arith.constant 0 : index
    %c0_40 = arith.constant 0 : index
    %c0_41 = arith.constant 0 : index
    %c0_42 = arith.constant 0 : index
    %58 = vector.load %arg13[%c0_39, %c0_40, %c0_41, %c0_42] : memref<1x4x8x8xbf16, #tpu.memory_space<vmem>>, vector<1x1x8x8xbf16>
    %59 = vector.shape_cast %58 : vector<1x1x8x8xbf16> to vector<8x8xbf16>
    %60 = vector.shape_cast %57 : vector<8x8xbf16> to vector<1x1x8x8xbf16>
    tpu.vector_store %arg13[%c0_39, %c0_40, %c0_41, %c0_42], %60 {strides = array<i32>} : memref<1x4x8x8xbf16, #tpu.memory_space<vmem>>, vector<1x1x8x8xbf16>,
    %c1 = arith.constant 1 : index
    %c0_43 = arith.constant 0 : index
    %c0_44 = arith.constant 0 : index
    %61 = vector.load %arg5[%c1, %c0_43, %c0_44] : memref<4x32x8xbf16, #tpu.memory_space<vmem>>, vector<1x32x8xbf16>
    %62 = vector.shape_cast %61 : vector<1x32x8xbf16> to vector<32x8xbf16>
    %cst_45 = arith.constant dense<0.000000e+00> : vector<8x8xf32>
    %63 = tpu.matmul %27, %62, %cst_45 {dimension_numbers = #tpu.dot_dimension_numbers<[1], [0], [0], [1], [0, 0, 1, 1], [], []>} : vector<8x32xbf16>, vector<32x8xbf16>, vector<8x8xf32> -> vector<8x8xf32>
    %c1_46 = arith.constant 1 : index
    %c0_47 = arith.constant 0 : index
    %c0_48 = arith.constant 0 : index
    %64 = vector.load %arg6[%c1_46, %c0_47, %c0_48] : memref<4x1x8xf32, #tpu.memory_space<vmem>>, vector<1x1x8xf32>
    %65 = vector.shape_cast %64 : vector<1x1x8xf32> to vector<1x8xf32>
    %66 = vector.broadcast %65 : vector<1x8xf32> to vector<8x8xf32>
    %67 = arith.addf %63, %66 : vector<8x8xf32>
    %c1_49 = arith.constant 1 : index
    %c0_50 = arith.constant 0 : index
    %c0_51 = arith.constant 0 : index
    %68 = vector.load %arg7[%c1_49, %c0_50, %c0_51] : memref<4x32x8xbf16, #tpu.memory_space<vmem>>, vector<1x32x8xbf16>
    %69 = vector.shape_cast %68 : vector<1x32x8xbf16> to vector<32x8xbf16>
    %cst_52 = arith.constant dense<0.000000e+00> : vector<8x8xf32>
    %70 = tpu.matmul %27, %69, %cst_52 {dimension_numbers = #tpu.dot_dimension_numbers<[1], [0], [0], [1], [0, 0, 1, 1], [], []>} : vector<8x32xbf16>, vector<32x8xbf16>, vector<8x8xf32> -> vector<8x8xf32>
    %c1_53 = arith.constant 1 : index
    %c0_54 = arith.constant 0 : index
    %c0_55 = arith.constant 0 : index
    %71 = vector.load %arg8[%c1_53, %c0_54, %c0_55] : memref<4x1x8xf32, #tpu.memory_space<vmem>>, vector<1x1x8xf32>
    %72 = vector.shape_cast %71 : vector<1x1x8xf32> to vector<1x8xf32>
    %73 = vector.broadcast %72 : vector<1x8xf32> to vector<8x8xf32>
    %74 = arith.addf %70, %73 : vector<8x8xf32>
    %c1_56 = arith.constant 1 : index
    %c0_57 = arith.constant 0 : index
    %c0_58 = arith.constant 0 : index
    %75 = vector.load %arg9[%c1_56, %c0_57, %c0_58] : memref<4x32x8xbf16, #tpu.memory_space<vmem>>, vector<1x32x8xbf16>
    %76 = vector.shape_cast %75 : vector<1x32x8xbf16> to vector<32x8xbf16>
    %cst_59 = arith.constant dense<0.000000e+00> : vector<8x8xf32>
    %77 = tpu.matmul %27, %76, %cst_59 {dimension_numbers = #tpu.dot_dimension_numbers<[1], [0], [0], [1], [0, 0, 1, 1], [], []>} : vector<8x32xbf16>, vector<32x8xbf16>, vector<8x8xf32> -> vector<8x8xf32>
    %c1_60 = arith.constant 1 : index
    %c0_61 = arith.constant 0 : index
    %c0_62 = arith.constant 0 : index
    %78 = vector.load %arg10[%c1_60, %c0_61, %c0_62] : memref<4x1x8xf32, #tpu.memory_space<vmem>>, vector<1x1x8xf32>
    %79 = vector.shape_cast %78 : vector<1x1x8xf32> to vector<1x8xf32>
    %80 = vector.broadcast %79 : vector<1x8xf32> to vector<8x8xf32>
    %81 = arith.addf %77, %80 : vector<8x8xf32>
    %82 = arith.truncf %67 : vector<8x8xf32> to vector<8x8xbf16>
    %c0_63 = arith.constant 0 : index
    %c1_64 = arith.constant 1 : index
    %c0_65 = arith.constant 0 : index
    %c0_66 = arith.constant 0 : index
    %83 = vector.load %arg11[%c0_63, %c1_64, %c0_65, %c0_66] : memref<1x4x8x8xbf16, #tpu.memory_space<vmem>>, vector<1x1x8x8xbf16>
    %84 = vector.shape_cast %83 : vector<1x1x8x8xbf16> to vector<8x8xbf16>
    %85 = vector.shape_cast %82 : vector<8x8xbf16> to vector<1x1x8x8xbf16>
    tpu.vector_store %arg11[%c0_63, %c1_64, %c0_65, %c0_66], %85 {strides = array<i32>} : memref<1x4x8x8xbf16, #tpu.memory_space<vmem>>, vector<1x1x8x8xbf16>,
    %86 = arith.truncf %74 : vector<8x8xf32> to vector<8x8xbf16>
    %c0_67 = arith.constant 0 : index
    %c1_68 = arith.constant 1 : index
    %c0_69 = arith.constant 0 : index
    %c0_70 = arith.constant 0 : index
    %87 = vector.load %arg12[%c0_67, %c1_68, %c0_69, %c0_70] : memref<1x4x8x8xbf16, #tpu.memory_space<vmem>>, vector<1x1x8x8xbf16>
    %88 = vector.shape_cast %87 : vector<1x1x8x8xbf16> to vector<8x8xbf16>
    %89 = vector.shape_cast %86 : vector<8x8xbf16> to vector<1x1x8x8xbf16>
    tpu.vector_store %arg12[%c0_67, %c1_68, %c0_69, %c0_70], %89 {strides = array<i32>} : memref<1x4x8x8xbf16, #tpu.memory_space<vmem>>, vector<1x1x8x8xbf16>,
    %90 = arith.truncf %81 : vector<8x8xf32> to vector<8x8xbf16>
    %c0_71 = arith.constant 0 : index
    %c1_72 = arith.constant 1 : index
    %c0_73 = arith.constant 0 : index
    %c0_74 = arith.constant 0 : index
    %91 = vector.load %arg13[%c0_71, %c1_72, %c0_73, %c0_74] : memref<1x4x8x8xbf16, #tpu.memory_space<vmem>>, vector<1x1x8x8xbf16>
    %92 = vector.shape_cast %91 : vector<1x1x8x8xbf16> to vector<8x8xbf16>
    %93 = vector.shape_cast %90 : vector<8x8xbf16> to vector<1x1x8x8xbf16>
    tpu.vector_store %arg13[%c0_71, %c1_72, %c0_73, %c0_74], %93 {strides = array<i32>} : memref<1x4x8x8xbf16, #tpu.memory_space<vmem>>, vector<1x1x8x8xbf16>,
    %c2 = arith.constant 2 : index
    %c0_75 = arith.constant 0 : index
    %c0_76 = arith.constant 0 : index
    %94 = vector.load %arg5[%c2, %c0_75, %c0_76] : memref<4x32x8xbf16, #tpu.memory_space<vmem>>, vector<1x32x8xbf16>
    %95 = vector.shape_cast %94 : vector<1x32x8xbf16> to vector<32x8xbf16>
    %cst_77 = arith.constant dense<0.000000e+00> : vector<8x8xf32>
    %96 = tpu.matmul %27, %95, %cst_77 {dimension_numbers = #tpu.dot_dimension_numbers<[1], [0], [0], [1], [0, 0, 1, 1], [], []>} : vector<8x32xbf16>, vector<32x8xbf16>, vector<8x8xf32> -> vector<8x8xf32>
    %c2_78 = arith.constant 2 : index
    %c0_79 = arith.constant 0 : index
    %c0_80 = arith.constant 0 : index
    %97 = vector.load %arg6[%c2_78, %c0_79, %c0_80] : memref<4x1x8xf32, #tpu.memory_space<vmem>>, vector<1x1x8xf32>
    %98 = vector.shape_cast %97 : vector<1x1x8xf32> to vector<1x8xf32>
    %99 = vector.broadcast %98 : vector<1x8xf32> to vector<8x8xf32>
    %100 = arith.addf %96, %99 : vector<8x8xf32>
    %c2_81 = arith.constant 2 : index
    %c0_82 = arith.constant 0 : index
    %c0_83 = arith.constant 0 : index
    %101 = vector.load %arg7[%c2_81, %c0_82, %c0_83] : memref<4x32x8xbf16, #tpu.memory_space<vmem>>, vector<1x32x8xbf16>
    %102 = vector.shape_cast %101 : vector<1x32x8xbf16> to vector<32x8xbf16>
    %cst_84 = arith.constant dense<0.000000e+00> : vector<8x8xf32>
    %103 = tpu.matmul %27, %102, %cst_84 {dimension_numbers = #tpu.dot_dimension_numbers<[1], [0], [0], [1], [0, 0, 1, 1], [], []>} : vector<8x32xbf16>, vector<32x8xbf16>, vector<8x8xf32> -> vector<8x8xf32>
    %c2_85 = arith.constant 2 : index
    %c0_86 = arith.constant 0 : index
    %c0_87 = arith.constant 0 : index
    %104 = vector.load %arg8[%c2_85, %c0_86, %c0_87] : memref<4x1x8xf32, #tpu.memory_space<vmem>>, vector<1x1x8xf32>
    %105 = vector.shape_cast %104 : vector<1x1x8xf32> to vector<1x8xf32>
    %106 = vector.broadcast %105 : vector<1x8xf32> to vector<8x8xf32>
    %107 = arith.addf %103, %106 : vector<8x8xf32>
    %c2_88 = arith.constant 2 : index
    %c0_89 = arith.constant 0 : index
    %c0_90 = arith.constant 0 : index
    %108 = vector.load %arg9[%c2_88, %c0_89, %c0_90] : memref<4x32x8xbf16, #tpu.memory_space<vmem>>, vector<1x32x8xbf16>
    %109 = vector.shape_cast %108 : vector<1x32x8xbf16> to vector<32x8xbf16>
    %cst_91 = arith.constant dense<0.000000e+00> : vector<8x8xf32>
    %110 = tpu.matmul %27, %109, %cst_91 {dimension_numbers = #tpu.dot_dimension_numbers<[1], [0], [0], [1], [0, 0, 1, 1], [], []>} : vector<8x32xbf16>, vector<32x8xbf16>, vector<8x8xf32> -> vector<8x8xf32>
    %c2_92 = arith.constant 2 : index
    %c0_93 = arith.constant 0 : index
    %c0_94 = arith.constant 0 : index
    %111 = vector.load %arg10[%c2_92, %c0_93, %c0_94] : memref<4x1x8xf32, #tpu.memory_space<vmem>>, vector<1x1x8xf32>
    %112 = vector.shape_cast %111 : vector<1x1x8xf32> to vector<1x8xf32>
    %113 = vector.broadcast %112 : vector<1x8xf32> to vector<8x8xf32>
    %114 = arith.addf %110, %113 : vector<8x8xf32>
    %115 = arith.truncf %100 : vector<8x8xf32> to vector<8x8xbf16>
    %c0_95 = arith.constant 0 : index
    %c2_96 = arith.constant 2 : index
    %c0_97 = arith.constant 0 : index
    %c0_98 = arith.constant 0 : index
    %116 = vector.load %arg11[%c0_95, %c2_96, %c0_97, %c0_98] : memref<1x4x8x8xbf16, #tpu.memory_space<vmem>>, vector<1x1x8x8xbf16>
    %117 = vector.shape_cast %116 : vector<1x1x8x8xbf16> to vector<8x8xbf16>
    %118 = vector.shape_cast %115 : vector<8x8xbf16> to vector<1x1x8x8xbf16>
    tpu.vector_store %arg11[%c0_95, %c2_96, %c0_97, %c0_98], %118 {strides = array<i32>} : memref<1x4x8x8xbf16, #tpu.memory_space<vmem>>, vector<1x1x8x8xbf16>,
    %119 = arith.truncf %107 : vector<8x8xf32> to vector<8x8xbf16>
    %c0_99 = arith.constant 0 : index
    %c2_100 = arith.constant 2 : index
    %c0_101 = arith.constant 0 : index
    %c0_102 = arith.constant 0 : index
    %120 = vector.load %arg12[%c0_99, %c2_100, %c0_101, %c0_102] : memref<1x4x8x8xbf16, #tpu.memory_space<vmem>>, vector<1x1x8x8xbf16>
    %121 = vector.shape_cast %120 : vector<1x1x8x8xbf16> to vector<8x8xbf16>
    %122 = vector.shape_cast %119 : vector<8x8xbf16> to vector<1x1x8x8xbf16>
    tpu.vector_store %arg12[%c0_99, %c2_100, %c0_101, %c0_102], %122 {strides = array<i32>} : memref<1x4x8x8xbf16, #tpu.memory_space<vmem>>, vector<1x1x8x8xbf16>,
    %123 = arith.truncf %114 : vector<8x8xf32> to vector<8x8xbf16>
    %c0_103 = arith.constant 0 : index
    %c2_104 = arith.constant 2 : index
    %c0_105 = arith.constant 0 : index
    %c0_106 = arith.constant 0 : index
    %124 = vector.load %arg13[%c0_103, %c2_104, %c0_105, %c0_106] : memref<1x4x8x8xbf16, #tpu.memory_space<vmem>>, vector<1x1x8x8xbf16>
    %125 = vector.shape_cast %124 : vector<1x1x8x8xbf16> to vector<8x8xbf16>
    %126 = vector.shape_cast %123 : vector<8x8xbf16> to vector<1x1x8x8xbf16>
    tpu.vector_store %arg13[%c0_103, %c2_104, %c0_105, %c0_106], %126 {strides = array<i32>} : memref<1x4x8x8xbf16, #tpu.memory_space<vmem>>, vector<1x1x8x8xbf16>,
    %c3 = arith.constant 3 : index
    %c0_107 = arith.constant 0 : index
    %c0_108 = arith.constant 0 : index
    %127 = vector.load %arg5[%c3, %c0_107, %c0_108] : memref<4x32x8xbf16, #tpu.memory_space<vmem>>, vector<1x32x8xbf16>
    %128 = vector.shape_cast %127 : vector<1x32x8xbf16> to vector<32x8xbf16>
    %cst_109 = arith.constant dense<0.000000e+00> : vector<8x8xf32>
    %129 = tpu.matmul %27, %128, %cst_109 {dimension_numbers = #tpu.dot_dimension_numbers<[1], [0], [0], [1], [0, 0, 1, 1], [], []>} : vector<8x32xbf16>, vector<32x8xbf16>, vector<8x8xf32> -> vector<8x8xf32>
    %c3_110 = arith.constant 3 : index
    %c0_111 = arith.constant 0 : index
    %c0_112 = arith.constant 0 : index
    %130 = vector.load %arg6[%c3_110, %c0_111, %c0_112] : memref<4x1x8xf32, #tpu.memory_space<vmem>>, vector<1x1x8xf32>
    %131 = vector.shape_cast %130 : vector<1x1x8xf32> to vector<1x8xf32>
    %132 = vector.broadcast %131 : vector<1x8xf32> to vector<8x8xf32>
    %133 = arith.addf %129, %132 : vector<8x8xf32>
    %c3_113 = arith.constant 3 : index
    %c0_114 = arith.constant 0 : index
    %c0_115 = arith.constant 0 : index
    %134 = vector.load %arg7[%c3_113, %c0_114, %c0_115] : memref<4x32x8xbf16, #tpu.memory_space<vmem>>, vector<1x32x8xbf16>
    %135 = vector.shape_cast %134 : vector<1x32x8xbf16> to vector<32x8xbf16>
    %cst_116 = arith.constant dense<0.000000e+00> : vector<8x8xf32>
    %136 = tpu.matmul %27, %135, %cst_116 {dimension_numbers = #tpu.dot_dimension_numbers<[1], [0], [0], [1], [0, 0, 1, 1], [], []>} : vector<8x32xbf16>, vector<32x8xbf16>, vector<8x8xf32> -> vector<8x8xf32>
    %c3_117 = arith.constant 3 : index
    %c0_118 = arith.constant 0 : index
    %c0_119 = arith.constant 0 : index
    %137 = vector.load %arg8[%c3_117, %c0_118, %c0_119] : memref<4x1x8xf32, #tpu.memory_space<vmem>>, vector<1x1x8xf32>
    %138 = vector.shape_cast %137 : vector<1x1x8xf32> to vector<1x8xf32>
    %139 = vector.broadcast %138 : vector<1x8xf32> to vector<8x8xf32>
    %140 = arith.addf %136, %139 : vector<8x8xf32>
    %c3_120 = arith.constant 3 : index
    %c0_121 = arith.constant 0 : index
    %c0_122 = arith.constant 0 : index
    %141 = vector.load %arg9[%c3_120, %c0_121, %c0_122] : memref<4x32x8xbf16, #tpu.memory_space<vmem>>, vector<1x32x8xbf16>
    %142 = vector.shape_cast %141 : vector<1x32x8xbf16> to vector<32x8xbf16>
    %cst_123 = arith.constant dense<0.000000e+00> : vector<8x8xf32>
    %143 = tpu.matmul %27, %142, %cst_123 {dimension_numbers = #tpu.dot_dimension_numbers<[1], [0], [0], [1], [0, 0, 1, 1], [], []>} : vector<8x32xbf16>, vector<32x8xbf16>, vector<8x8xf32> -> vector<8x8xf32>
    %c3_124 = arith.constant 3 : index
    %c0_125 = arith.constant 0 : index
    %c0_126 = arith.constant 0 : index
    %144 = vector.load %arg10[%c3_124, %c0_125, %c0_126] : memref<4x1x8xf32, #tpu.memory_space<vmem>>, vector<1x1x8xf32>
    %145 = vector.shape_cast %144 : vector<1x1x8xf32> to vector<1x8xf32>
    %146 = vector.broadcast %145 : vector<1x8xf32> to vector<8x8xf32>
    %147 = arith.addf %143, %146 : vector<8x8xf32>
    %148 = arith.truncf %133 : vector<8x8xf32> to vector<8x8xbf16>
    %c0_127 = arith.constant 0 : index
    %c3_128 = arith.constant 3 : index
    %c0_129 = arith.constant 0 : index
    %c0_130 = arith.constant 0 : index
    %149 = vector.load %arg11[%c0_127, %c3_128, %c0_129, %c0_130] : memref<1x4x8x8xbf16, #tpu.memory_space<vmem>>, vector<1x1x8x8xbf16>
    %150 = vector.shape_cast %149 : vector<1x1x8x8xbf16> to vector<8x8xbf16>
    %151 = vector.shape_cast %148 : vector<8x8xbf16> to vector<1x1x8x8xbf16>
    tpu.vector_store %arg11[%c0_127, %c3_128, %c0_129, %c0_130], %151 {strides = array<i32>} : memref<1x4x8x8xbf16, #tpu.memory_space<vmem>>, vector<1x1x8x8xbf16>,
    %152 = arith.truncf %140 : vector<8x8xf32> to vector<8x8xbf16>
    %c0_131 = arith.constant 0 : index
    %c3_132 = arith.constant 3 : index
    %c0_133 = arith.constant 0 : index
    %c0_134 = arith.constant 0 : index
    %153 = vector.load %arg12[%c0_131, %c3_132, %c0_133, %c0_134] : memref<1x4x8x8xbf16, #tpu.memory_space<vmem>>, vector<1x1x8x8xbf16>
    %154 = vector.shape_cast %153 : vector<1x1x8x8xbf16> to vector<8x8xbf16>
    %155 = vector.shape_cast %152 : vector<8x8xbf16> to vector<1x1x8x8xbf16>
    tpu.vector_store %arg12[%c0_131, %c3_132, %c0_133, %c0_134], %155 {strides = array<i32>} : memref<1x4x8x8xbf16, #tpu.memory_space<vmem>>, vector<1x1x8x8xbf16>,
    %156 = arith.truncf %147 : vector<8x8xf32> to vector<8x8xbf16>
    %c0_135 = arith.constant 0 : index
    %c3_136 = arith.constant 3 : index
    %c0_137 = arith.constant 0 : index
    %c0_138 = arith.constant 0 : index
    %157 = vector.load %arg13[%c0_135, %c3_136, %c0_137, %c0_138] : memref<1x4x8x8xbf16, #tpu.memory_space<vmem>>, vector<1x1x8x8xbf16>
    %158 = vector.shape_cast %157 : vector<1x1x8x8xbf16> to vector<8x8xbf16>
    %159 = vector.shape_cast %156 : vector<8x8xbf16> to vector<1x1x8x8xbf16>
    tpu.vector_store %arg13[%c0_135, %c3_136, %c0_137, %c0_138], %159 {strides = array<i32>} : memref<1x4x8x8xbf16, #tpu.memory_space<vmem>>, vector<1x1x8x8xbf16>,
    return
  }
  func.func @transform_0(%arg0: i32, %arg1: i32) -> (i32, i32, i32) {
    %c0_i32 = arith.constant 0 : i32
    %c0_i32_0 = arith.constant 0 : i32
    return %arg0, %arg1, %c0_i32 : i32, i32, i32
  }
  func.func @transform_1(%arg0: i32, %arg1: i32) -> (i32, i32) {
    %c0_i32 = arith.constant 0 : i32
    %c0_i32_0 = arith.constant 0 : i32
    %c0_i32_1 = arith.constant 0 : i32
    return %c0_i32, %c0_i32_0 : i32, i32
  }
  func.func @transform_2(%arg0: i32, %arg1: i32) -> (i32, i32) {
    %c0_i32 = arith.constant 0 : i32
    %c0_i32_0 = arith.constant 0 : i32
    %c0_i32_1 = arith.constant 0 : i32
    return %c0_i32, %c0_i32_0 : i32, i32
  }
  func.func @transform_3(%arg0: i32, %arg1: i32) -> (i32, i32, i32) {
    %c0_i32 = arith.constant 0 : i32
    %c0_i32_0 = arith.constant 0 : i32
    %c0_i32_1 = arith.constant 0 : i32
    %c0_i32_2 = arith.constant 0 : i32
    return %c0_i32, %c0_i32_0, %c0_i32_1 : i32, i32, i32
  }
  func.func @transform_4(%arg0: i32, %arg1: i32) -> (i32, i32, i32) {
    %c0_i32 = arith.constant 0 : i32
    %c0_i32_0 = arith.constant 0 : i32
    %c0_i32_1 = arith.constant 0 : i32
    %c0_i32_2 = arith.constant 0 : i32
    return %c0_i32, %c0_i32_0, %c0_i32_1 : i32, i32, i32
  }
  func.func @transform_5(%arg0: i32, %arg1: i32) -> (i32, i32, i32) {
    %c0_i32 = arith.constant 0 : i32
    %c0_i32_0 = arith.constant 0 : i32
    %c0_i32_1 = arith.constant 0 : i32
    %c0_i32_2 = arith.constant 0 : i32
    return %c0_i32, %c0_i32_0, %c0_i32_1 : i32, i32, i32
  }
  func.func @transform_6(%arg0: i32, %arg1: i32) -> (i32, i32, i32) {
    %c0_i32 = arith.constant 0 : i32
    %c0_i32_0 = arith.constant 0 : i32
    %c0_i32_1 = arith.constant 0 : i32
    %c0_i32_2 = arith.constant 0 : i32
    return %c0_i32, %c0_i32_0, %c0_i32_1 : i32, i32, i32
  }
  func.func @transform_7(%arg0: i32, %arg1: i32) -> (i32, i32, i32) {
    %c0_i32 = arith.constant 0 : i32
    %c0_i32_0 = arith.constant 0 : i32
    %c0_i32_1 = arith.constant 0 : i32
    %c0_i32_2 = arith.constant 0 : i32
    return %c0_i32, %c0_i32_0, %c0_i32_1 : i32, i32, i32
  }
  func.func @transform_8(%arg0: i32, %arg1: i32) -> (i32, i32, i32) {
    %c0_i32 = arith.constant 0 : i32
    %c0_i32_0 = arith.constant 0 : i32
    %c0_i32_1 = arith.constant 0 : i32
    %c0_i32_2 = arith.constant 0 : i32
    return %c0_i32, %c0_i32_0, %c0_i32_1 : i32, i32, i32
  }
  func.func @transform_9(%arg0: i32, %arg1: i32) -> (i32, i32, i32, i32) {
    %c0_i32 = arith.constant 0 : i32
    %c0_i32_0 = arith.constant 0 : i32
    %c0_i32_1 = arith.constant 0 : i32
    return %arg0, %c0_i32, %arg1, %c0_i32_0 : i32, i32, i32, i32
  }
  func.func @transform_10(%arg0: i32, %arg1: i32) -> (i32, i32, i32, i32) {
    %c0_i32 = arith.constant 0 : i32
    %c0_i32_0 = arith.constant 0 : i32
    %c0_i32_1 = arith.constant 0 : i32
    return %arg0, %c0_i32, %arg1, %c0_i32_0 : i32, i32, i32, i32
  }
  func.func @transform_11(%arg0: i32, %arg1: i32) -> (i32, i32, i32, i32) {
    %c0_i32 = arith.constant 0 : i32
    %c0_i32_0 = arith.constant 0 : i32
    %c0_i32_1 = arith.constant 0 : i32
    return %arg0, %c0_i32, %arg1, %c0_i32_0 : i32, i32, i32, i32
  }
}

</mosaic_0001>

<bundles_post_ra>
// kernel: tpu_custom_call.1
= control target key start
LH: loop header
LB: loop body
LE: loop exit
PB: predicated region body
PF: predicated region fallthrough
CT: control target
= control target key end

     0   :  { %s2467_s0 = inlined_call_operand.vmem [shape: bf16[2,8,32], index: 0, kind: input, shape index: {}]   ;;  %s2468_s1 = inlined_call_operand.vmem [shape: f32[1,32], index: 1, kind: input, shape index: {}]   ;;  %s2469_s2 = inlined_call_operand.vmem [shape: f32[1,32], index: 2, kind: input, shape index: {}]   ;;  %s2470_s3 = inlined_call_operand.vmem [shape: bf16[4,32,8], index: 3, kind: input, shape index: {}]   ;;  %s2471_s4 = inlined_call_operand.vmem [shape: f32[4,1,8], index: 4, kind: input, shape index: {}]   ;;  %s2472_s5 = inlined_call_operand.vmem [shape: bf16[4,32,8], index: 5, kind: input, shape index: {}]   ;;  %s2473_s6 = inlined_call_operand.vmem [shape: f32[4,1,8], index: 6, kind: input, shape index: {}]   ;;  %s2474_s7 = inlined_call_operand.vmem [shape: bf16[4,32,8], index: 7, kind: input, shape index: {}]   ;;  %s2475_s8 = inlined_call_operand.vmem [shape: f32[4,1,8], index: 8, kind: input, shape index: {}]   ;;  %s2476_s9 = inlined_call_operand.hbm [shape: bf16[2,4,8,8], index: 9, kind: output, shape index: {0}]   ;;  %s2477_s10 = inlined_call_operand.hbm [shape: bf16[2,4,8,8], index: 10, kind: output, shape index: {1}]   ;;  %s2478_s11 = inlined_call_operand.hbm [shape: bf16[2,4,8,8], index: 11, kind: output, shape index: {2}]  }
   0x1   :  { %2486 = sst [smem:[#allocation9_spill]] %s2467_s0 }
   0x2   :  { %2487 = sst [smem:[#allocation10_spill]] %s2468_s1 }
   0x3   :  { %2488 = sst [smem:[#allocation11_spill]] %s2469_s2 }
   0x4   :  { %2489 = sst [smem:[#allocation12_spill]] %s2470_s3 }
   0x5   :  { %2490 = sst [smem:[#allocation13_spill]] %s2471_s4 }
   0x6   :  { %17 = vsyncpa [#allocation3], 0 }
   0x7   :  { %19 = vsyncpa [#allocation3 + $0x1], 0 }
   0x8   :  { %20 = vsyncpa [#allocation5], 0 }
   0x9   :  { %22 = vsyncpa [#allocation5 + $0x1], 0  ;;  %s2035_s17 = smov 0   ;;  %s2037_s18 = smov 0  }
   0xa   :  { %s2039_s19 = smov 0   ;;  %s2041_s20 = smov 0  }
   0xb   :  { %s2043_s21 = smov 0   ;;  %s2045_s22 = smov 0  }
   0xc LB: > { %s2480_s23 = sadd.s32 4294967295, %s1966_s22   ;;  %s2479_s24 = sadd.s32 4294967294, %s1966_s22   ;;  %s1966_s22 = sphi %s2045_s22, %s28_s22   ;;  %s1962_s21 = sphi %s2043_s21, %s2507_s21   ;;  %s1958_s20 = sphi %s2041_s20, %s2506_s20   ;;  %s1954_s19 = sphi %s2039_s19, %s2505_s19   ;;  %s1950_s18 = sphi %s2037_s18, %s2504_s18   ;;  %s1946_s17 = sphi %s2035_s17, %s2503_s17  }
   0xd   : > { %s40_s25 = sadd.s32 1, %s1962_s21  ;;  %s245_s26 = sadd.s32 1, %s1954_s19 }
   0xe   : > { %p42_p0 = scmp.ge.s32.totalorder %s40_s25, 2  ;;  %p255_p1 = scmp.ne.s32.totalorder %s1954_s19, %s1950_s18 }
   0xf   : > { %p256_p2 = scmp.eq.s32.totalorder %s2480_s23, 1  ;;  %p261_p3 = scmp.ne.s32.totalorder %s1950_s18, %s1946_s17 }
  0x10   : > { %s2509_s25 = smov (%p42_p0, %s40_s25), 0  ;;  %p262_p5 = scmp.eq.s32.totalorder %s2479_s24, 1 }
  0x11   : > { %p2077_p4 = por %p256_p2, %p255_p1  ;;  %s240_s28 = ssub.s32 %s1962_s21, %s2509_s25 }
  0x12   : > { %p1478_p6 = scmp.ge.s32.totalorder %s1966_s22, 1  ;;  %p243_p7 = scmp.eq.s32.totalorder %s240_s28, 0 }
  0x13   : > { %p2086_p8 = por %p262_p5, %p261_p3  ;;  %p370_p9 = scmp.lt.s32.totalorder %s1966_s22, 3 }
  0x14   : > { %s2092_s30 = scalar_select %p243_p7, %s1954_s19, %s245_s26  }
  0x15   : > { %p371_p10 = pnand %p1478_p6, %p370_p9 }
  0x16   : > { %p422_p11 = scmp.lt.s32.totalorder (!%p371_p10), %s1958_s20, 1  ;;  %vm434_vm0 = vcmask (!%p371_p10), 261120   ;;  %s2493_s0 = sld [smem:[#allocation9_spill]] (!%p371_p10)  ;;  %v1803_v9 = vld [vmem:[%s2472_s5] sm:$0xff] (!%p371_p10)   ;;  %v1968_v10 = vmov (!%p371_p10), 0.0   ;;  %v1805_v12 = vld [vmem:[%s2472_s5 + $0x8] sm:$0xff] (!%p371_p10)  }
  0x17   : > { %374 = sbr.rel (%p371_p10) target bundleno = 670 (0x29e), region = 56  ;;  %s2494_s3 = sld [smem:[#allocation12_spill]] (!%p371_p10)  ;;  %1637 = vmatprep.subr.bf16.mxu0 (!%p371_p10), %v1968_v10  ;;  %1645 = vmatprep.subr.bf16.mxu1 (!%p371_p10), %v1968_v10  ;;  %vm1969_vm1 = vmmov (!%p371_p10), 0   ;;  %v1806_v22 = vld [vmem:[%s2474_s7] sm:$0xff] (!%p371_p10)   ;;  %v1808_v25 = vld [vmem:[%s2474_s7 + $0x8] sm:$0xff] (!%p371_p10)   ;;  %v1810_v27 = vld [vmem:[%s2472_s5 + $0x10] sm:$0xff] (!%p371_p10)  }
  0x18   : > { %1646 = vmatpush3.bf16.msra.mxu1 (!%p371_p10), %v1803_v9  ;;  %1641 = vmatprep.mubr.msk.bf16.mxu0 (!%p371_p10), %vm1969_vm1, %v1968_v10  ;;  %s2495_s1 = sld [smem:[#allocation10_spill]] (!%p371_p10)  ;;  %s2496_s2 = sld [smem:[#allocation11_spill]] (!%p371_p10)  ;;  %v1811_v28 = vld [vmem:[%s2474_s7 + $0x10] sm:$0xff] (!%p371_p10)   ;;  %v1812_v29 = vld [vmem:[%s2472_s5 + $0x18] sm:$0xff] (!%p371_p10)   ;;  %v1815_v32 = vld [vmem:[%s2472_s5 + $0x20] sm:$0xff] (!%p371_p10)   ;;  %vm657_vm2 = vcmask (!%p371_p10), 60416  }
  0x19   : > { %1647 = vmatprep.subr.bf16.mxu1 (!%p371_p10), %v1968_v10  ;;  %1649 = vmatprep.mubr.msk.bf16.mxu1 (!%p371_p10), %vm1969_vm1, %v1968_v10  ;;  %v1813_v30 = vld [vmem:[%s2474_s7 + $0x18] sm:$0xff] (!%p371_p10)   ;;  %v1817_v34 = vld [vmem:[%s2472_s5 + $0x28] sm:$0xff] (!%p371_p10)   ;;  %v1818_v35 = vld [vmem:[%s2474_s7 + $0x20] sm:$0xff] (!%p371_p10)   ;;  %s2497_s4 = sld [smem:[#allocation13_spill]] (!%p371_p10) }
  0x1a   : > { %v1820_v37 = vld [vmem:[%s2474_s7 + $0x28] sm:$0xff] (!%p371_p10)   ;;  %v1822_v39 = vld [vmem:[%s2472_s5 + $0x30] sm:$0xff] (!%p371_p10)   ;;  %v1824_v41 = vld [vmem:[%s2472_s5 + $0x38] sm:$0xff] (!%p371_p10)  }
  0x1b   : > { %v1823_v40 = vld [vmem:[%s2474_s7 + $0x30] sm:$0xff] (!%p371_p10)   ;;  %v1825_v42 = vld [vmem:[%s2474_s7 + $0x38] sm:$0xff] (!%p371_p10)   ;;  %v1489_v44 = vld [vmem:[%s2473_s6] ss:$0 sm:$0xff] (!%p371_p10) }
  0x1c   : > { %1648 = vmatpush3.bf16.msra.mxu1 (!%p371_p10), %v1805_v12  ;;  %v1493_v57 = vld [vmem:[%s2475_s8] ss:$0 sm:$0xff] (!%p371_p10) }
  0x1d   : > { %v1802_v8 = vld [vmem:[%s2494_s3] sm:$0xff] (!%p371_p10)   ;;  %v1804_v11 = vld [vmem:[%s2494_s3 + $0x8] sm:$0xff] (!%p371_p10)   ;;  %1661 = vmatprep.subr.bf16.mxu1 (!%p371_p10), %v1968_v10  ;;  %v1807_v23 = vld [vmem:[%s2494_s3 + $0x10] sm:$0xff] (!%p371_p10)  }
  0x1e   : > { %s423_s12 = scalar_select %p422_p11, %s1958_s20, 1  ;;  %1638 = vmatpush3.bf16.msra.mxu0 %v1802_v8  ;;  %v1483_v17 = vld [vmem:[%s2495_s1] ss:$0 sm:$0xff]  ;;  %v1809_v26 = vld [vmem:[%s2494_s3 + $0x18] sm:$0xff]   ;;  %v1816_v33 = vld [vmem:[%s2494_s3 + $0x28] sm:$0xff]  }
  0x1f   : > { %1639 = vmatprep.subr.bf16.mxu0 %v1968_v10  ;;  %v1484_v19 = vld [vmem:[%s2496_s2] ss:$0 sm:$0xff]  ;;  %v1819_v36 = vld [vmem:[%s2494_s3 + $0x30] sm:$0xff]   ;;  %v1821_v38 = vld [vmem:[%s2494_s3 + $0x38] sm:$0xff]   ;;  %s2498_s2 = sand.u32 1, %s1950_s18  }
  0x20   : > { %s1482_s13 = sshll.u32 %s423_s12, 2  ;;  %v1814_v31 = vld [vmem:[%s2494_s3 + $0x20] sm:$0xff]   ;;  %s2337_s3 = scalar_lea.sflag [#allocation3], %s2498_s2 }
  0x21   : > { %s428_s16 = scalar_lea.vmem %s2493_s0, %s1482_s13  ;;  %s2481_s13 = sand.u32 1, %s1950_s18   ;;  %v1485_v43 = vld [vmem:[%s2497_s4] ss:$0 sm:$0xff]  ;;  %v1502_v58 = vld [vmem:[%s2497_s4 + $0x1] ss:$0 sm:$0xff] }
  0x22   : > { %v430_v0 = vld [vmem:[%s428_s16] sm:$0xf]  ;;  %1640 = vmatpush3.bf16.msra.mxu0 %v1804_v11  ;;  %s2262_s26 = sshll.u32 %s2481_s13, 4  ;;  %s2315_s13 = sshll.u32 %s1958_s20, 8 }
  0x23   : > { %v431_v1 = vunpack.c.l.bf16 %v430_v0  ;;  %1653 = vmatprep.subr.bf16.mxu0 %v1968_v10  ;;  %s2265_s28 = scalar_lea.vmem [#allocation2], %s2262_s26  ;;  %s2270_s12 = scalar_lea.vmem [#allocation4], %s2262_s26  ;;  %v1520_v8 = vld [vmem:[%s2475_s8 + $0x1] ss:$0 sm:$0xff] }
  0x24   : > { %s2281_s23 = scalar_lea.vmem [#allocation6], %s2262_s26  ;;  %s1300_s16 = sshll.u32 %s2265_s28, 4  ;;  %s2317_s16 = int_to_ptr.vmem [resolvable:$true] %s1300_s16 }
  0x25   : > { %v435_v2 = vsel %vm434_vm0, %v431_v1, 0.0  ;;  %s2323_s26 = scalar_lea.hbm %s2476_s9, %s2315_s13  ;;  %s1970_s20 = smov [#allocation2]  }
  0x26   : > { %436 = vadd.xlane.f32.xlu0 %v435_v2  ;;  %s1832_s24 = sshll.u32 %s1970_s20, 4  ;;  %s1833_s24 = int_to_ptr.vmem [resolvable:$false] %s1832_s24 }
  0x27   : > { %p1835_p1 = scmp.lt.s32.totalorder %s2317_s16, %s1833_s24 }
  0xb3   : > { %v437_v3 = vpop.xlane.xlu0 %436 }
  0xb4   : > { %v439_v4 = vmul.f32 0.03125, %v437_v3 }
  0xb6   : > { %v440_v5 = vsub.f32 %v431_v1, %v439_v4 }
  0xb8   : > { %v441_v6 = vmul.f32 %v440_v5, %v440_v5 }
  0xba   : > { %v442_v7 = vsel %vm434_vm0, %v441_v6, 0.0 }
  0xbb   : > { %443 = vadd.xlane.f32.xlu0 %v442_v7  ;;  %v1511_v7 = vld [vmem:[%s2473_s6 + $0x1] ss:$0 sm:$0xff] }
 0x148   : > { %v444_v13 = vpop.xlane.xlu0 %443 }
 0x149   : > { %v445_v14 = vmul.f32 0.03125, %v444_v13 }
 0x14b   : > { %v446_v15 = vadd.f32 1e-05, %v445_v14 }
 0x14d   : > { %1826 = vrsqrt.f32 %v446_v15 }
 0x157   : > { %v1827_v16 = vpop.eup %1826 }
 0x158   : > { %v448_v18 = vmul.f32 %v1827_v16, %v440_v5 }
 0x15a   : > { %v455_v20 = vmul.f32 %v1483_v17, %v448_v18 }
 0x15c   : > { %v462_v21 = vadd.f32 %v1484_v19, %v455_v20 }
 0x15e   : > { %v2135_v24 = vpack.c.bf16 %v462_v21, %v462_v21  ;;  %v1532_v21 = vld [vmem:[%s2497_s4 + $0x2] ss:$0 sm:$0xff] }
 0x160   : > { %1642 = vmatmul.mubr.msk.bf16.vlgmr.msra.gmra.mrb[0].mxu0 %vm434_vm0, %v2135_v24  ;;  %1650 = vmatmul.mubr.msk.bf16.vlgmr.msra.gmra.mrb[0].mxu1 %vm434_vm0, %v2135_v24 }
 0x161   : > { %1654 = vmatpush3.bf16.msra.mxu0 %v1806_v22  ;;  %1662 = vmatpush3.bf16.msra.mxu1 %v1807_v23  ;;  %v1541_v22 = vld [vmem:[%s2473_s6 + $0x2] ss:$0 sm:$0xff] }
 0x162   : > { %1655 = vmatprep.subr.bf16.mxu0 %v1968_v10  ;;  %1663 = vmatprep.subr.bf16.mxu1 %v1968_v10 }
 0x163   : > { %1657 = vmatprep.mubr.msk.bf16.mxu0 %vm1969_vm1, %v1968_v10  ;;  %1665 = vmatprep.mubr.msk.bf16.mxu1 %vm1969_vm1, %v1968_v10 }
 0x165   : > { %1656 = vmatpush3.bf16.msra.mxu0 %v1808_v25  ;;  %1664 = vmatpush3.bf16.msra.mxu1 %v1809_v26 }
 0x166   : > { %1669 = vmatprep.subr.bf16.mxu0 %v1968_v10  ;;  %1677 = vmatprep.subr.bf16.mxu1 %v1968_v10 }
 0x168   : > { %1658 = vmatmul.mubr.msk.bf16.vlgmr.msra.gmra.mrb[4].mxu0 %vm434_vm0, %v2135_v24  ;;  %1666 = vmatmul.mubr.msk.bf16.vlgmr.msra.gmra.mrb[4].mxu1 %vm434_vm0, %v2135_v24 }
 0x169   : > { %1670 = vmatpush3.bf16.msra.mxu0 %v1810_v27  ;;  %1678 = vmatpush3.bf16.msra.mxu1 %v1811_v28 }
 0x16a   : > { %1671 = vmatprep.subr.bf16.mxu0 %v1968_v10  ;;  %1679 = vmatprep.subr.bf16.mxu1 %v1968_v10 }
 0x16b   : > { %1673 = vmatprep.mubr.msk.bf16.mxu0 %vm1969_vm1, %v1968_v10  ;;  %1681 = vmatprep.mubr.msk.bf16.mxu1 %vm1969_vm1, %v1968_v10 }
 0x16d   : > { %1672 = vmatpush3.bf16.msra.mxu0 %v1812_v29  ;;  %1680 = vmatpush3.bf16.msra.mxu1 %v1813_v30 }
 0x16e   : > { %1685 = vmatprep.subr.bf16.mxu0 %v1968_v10  ;;  %1693 = vmatprep.subr.bf16.mxu1 %v1968_v10 }
 0x170   : > { %1674 = vmatmul.mubr.msk.bf16.vlgmr.msra.gmra.mrb[8].mxu0 %vm434_vm0, %v2135_v24  ;;  %1682 = vmatmul.mubr.msk.bf16.vlgmr.msra.gmra.mrb[8].mxu1 %vm434_vm0, %v2135_v24 }
 0x171   : > { %1686 = vmatpush3.bf16.msra.mxu0 %v1814_v31  ;;  %1694 = vmatpush3.bf16.msra.mxu1 %v1815_v32 }
 0x172   : > { %1687 = vmatprep.subr.bf16.mxu0 %v1968_v10  ;;  %1695 = vmatprep.subr.bf16.mxu1 %v1968_v10 }
 0x173   : > { %1689 = vmatprep.mubr.msk.bf16.mxu0 %vm1969_vm1, %v1968_v10  ;;  %1697 = vmatprep.mubr.msk.bf16.mxu1 %vm1969_vm1, %v1968_v10 }
 0x175   : > { %1688 = vmatpush3.bf16.msra.mxu0 %v1816_v33  ;;  %1696 = vmatpush3.bf16.msra.mxu1 %v1817_v34 }
 0x176   : > { %1701 = vmatprep.subr.bf16.mxu0 %v1968_v10  ;;  %1709 = vmatprep.subr.bf16.mxu1 %v1968_v10 }
 0x178   : > { %1690 = vmatmul.mubr.msk.bf16.vlgmr.msra.gmra.mrb[12].mxu0 %vm434_vm0, %v2135_v24  ;;  %1698 = vmatmul.mubr.msk.bf16.vlgmr.msra.gmra.mrb[12].mxu1 %vm434_vm0, %v2135_v24 }
 0x179   : > { %1702 = vmatpush3.bf16.msra.mxu0 %v1818_v35  ;;  %1710 = vmatpush3.bf16.msra.mxu1 %v1819_v36  ;;  %v1550_v35 = vld [vmem:[%s2475_s8 + $0x2] ss:$0 sm:$0xff]  ;;  %v1562_v36 = vld [vmem:[%s2497_s4 + $0x3] ss:$0 sm:$0xff]  ;;  %s1828_s4 = scalar_lea.vmem %s2317_s16, 256 }
 0x17a   : > { %1703 = vmatprep.subr.bf16.mxu0 %v1968_v10  ;;  %1711 = vmatprep.subr.bf16.mxu1 %v1968_v10  ;;  %p1829_p12 = scmp.ne.s32.totalorder %s2317_s16, %s1828_s4 }
 0x17b   : > { %1705 = vmatprep.mubr.msk.bf16.mxu0 %vm1969_vm1, %v1968_v10  ;;  %1713 = vmatprep.mubr.msk.bf16.mxu1 %vm1969_vm1, %v1968_v10 }
 0x17c   : > { %p1830_p13 = pnand %p1829_p12, %p2077_p4 }
 0x17d   : > { %1704 = vmatpush3.bf16.msra.mxu0 %v1820_v37  ;;  %1712 = vmatpush3.bf16.msra.mxu1 %v1821_v38 }
 0x17e   : > { %1717 = vmatprep.subr.bf16.mxu0 %v1968_v10  ;;  %1725 = vmatprep.subr.bf16.mxu1 %v1968_v10  ;;  %p1831_p0 = pneg %p1830_p13 }
 0x180   : > { %1706 = vmatmul.mubr.msk.bf16.vlgmr.msra.gmra.mrb[16].mxu0 %vm434_vm0, %v2135_v24  ;;  %1714 = vmatmul.mubr.msk.bf16.vlgmr.msra.gmra.mrb[16].mxu1 %vm434_vm0, %v2135_v24 }
 0x181   : > { %1718 = vmatpush3.bf16.msra.mxu0 %v1822_v39  ;;  %1726 = vmatpush3.bf16.msra.mxu1 %v1823_v40 }
 0x182   : > { %1719 = vmatprep.subr.bf16.mxu0 %v1968_v10  ;;  %1727 = vmatprep.subr.bf16.mxu1 %v1968_v10 }
 0x183   : > { %1721 = vmatprep.mubr.msk.bf16.mxu0 %vm1969_vm1, %v1968_v10  ;;  %1729 = vmatprep.mubr.msk.bf16.mxu1 %vm1969_vm1, %v1968_v10 }
 0x185   : > { %1720 = vmatpush3.bf16.msra.mxu0 %v1824_v41  ;;  %1728 = vmatpush3.bf16.msra.mxu1 %v1825_v42 }
 0x188   : > { %1722 = vmatmul.mubr.msk.bf16.vlgmr.msra.gmra.mrb[20].mxu0 %vm434_vm0, %v2135_v24  ;;  %1730 = vmatmul.mubr.msk.bf16.vlgmr.msra.gmra.mrb[20].mxu1 %vm434_vm0, %v2135_v24 }
 0x233   : > { %v524_v45 = vpop.f32.mrb[0].mxu0  ;;  %v587_v46 = vpop.f32.mrb[0].mxu1 }
 0x234   : > { %v525_v47 = vadd.f32 %v1485_v43, %v524_v45  ;;  %v588_v48 = vadd.f32 %v1489_v44, %v587_v46  ;;  %v1643_v49 = vpop.f32.mrb[1].mxu0  ;;  %v1651_v50 = vpop.f32.mrb[1].mxu1 }
 0x235   : > { %v527_v51 = vpop.f32.mrb[2].mxu0  ;;  %v590_v52 = vpop.f32.mrb[2].mxu1  ;;  %v1571_v49 = vld [vmem:[%s2473_s6 + $0x3] ss:$0 sm:$0xff] }
 0x236   : > { %v656_v53 = vpack.c.bf16 %v525_v47, %v525_v47  ;;  %v659_v54 = vpack.c.bf16 %v588_v48, %v588_v48  ;;  %v1644_v55 = vpop.f32.mrb[3].mxu0  ;;  %v1652_v56 = vpop.f32.mrb[3].mxu1  ;;  %v1580_v50 = vld [vmem:[%s2475_s8 + $0x3] ss:$0 sm:$0xff] }
 0x238   : > { %658 = vst.msk [vmem:[%s2265_s28] sm:$0xf] %vm657_vm2, %v656_v53  ;;  %660 = vst.msk [vmem:[%s2270_s12] sm:$0xf] %vm657_vm2, %v659_v54 }
 0x23b   : > { %v650_v59 = vpop.f32.mrb[4].mxu0  ;;  %v722_v60 = vpop.f32.mrb[4].mxu1 }
 0x23c   : > { %v651_v61 = vadd.f32 %v1493_v57, %v650_v59  ;;  %v723_v62 = vadd.f32 %v1502_v58, %v722_v60  ;;  %v1659_v63 = vpop.f32.mrb[5].mxu0  ;;  %v1667_v0 = vpop.f32.mrb[5].mxu1 }
 0x23d   : > { %v653_v1 = vpop.f32.mrb[6].mxu0  ;;  %v725_v2 = vpop.f32.mrb[6].mxu1 }
 0x23e   : > { %v661_v3 = vpack.c.bf16 %v651_v61, %v651_v61  ;;  %v858_v4 = vpack.c.bf16 %v723_v62, %v723_v62  ;;  %v1660_v5 = vpop.f32.mrb[7].mxu0  ;;  %v1668_v6 = vpop.f32.mrb[7].mxu1 }
 0x240   : > { %662 = vst.msk [vmem:[%s2281_s23] sm:$0xf] %vm657_vm2, %v661_v3  ;;  %1524 = vst.msk [vmem:[%s2265_s28 + $0x4] sm:$0xf] %vm657_vm2, %v858_v4 }
 0x243   : > { %v787_v9 = vpop.f32.mrb[8].mxu0  ;;  %v852_v10 = vpop.f32.mrb[8].mxu1 }
 0x244   : > { %v788_v11 = vadd.f32 %v1511_v7, %v787_v9  ;;  %v853_v12 = vadd.f32 %v1520_v8, %v852_v10  ;;  %v1675_v13 = vpop.f32.mrb[9].mxu0  ;;  %v1683_v14 = vpop.f32.mrb[9].mxu1 }
 0x245   : > { %v790_v15 = vpop.f32.mrb[10].mxu0  ;;  %v855_v16 = vpop.f32.mrb[10].mxu1 }
 0x246   : > { %v861_v17 = vpack.c.bf16 %v788_v11, %v788_v11  ;;  %v864_v18 = vpack.c.bf16 %v853_v12, %v853_v12  ;;  %v1676_v19 = vpop.f32.mrb[11].mxu0  ;;  %v1684_v20 = vpop.f32.mrb[11].mxu1 }
 0x248   : > { %1525 = vst.msk [vmem:[%s2270_s12 + $0x4] sm:$0xf] %vm657_vm2, %v861_v17  ;;  %1526 = vst.msk [vmem:[%s2281_s23 + $0x4] sm:$0xf] %vm657_vm2, %v864_v18 }
 0x24b   : > { %v926_v23 = vpop.f32.mrb[12].mxu0  ;;  %v991_v24 = vpop.f32.mrb[12].mxu1 }
 0x24c   : > { %v927_v25 = vadd.f32 %v1532_v21, %v926_v23  ;;  %v992_v26 = vadd.f32 %v1541_v22, %v991_v24  ;;  %v1691_v27 = vpop.f32.mrb[13].mxu0  ;;  %v1699_v28 = vpop.f32.mrb[13].mxu1 }
 0x24d   : > { %v929_v29 = vpop.f32.mrb[14].mxu0  ;;  %v994_v30 = vpop.f32.mrb[14].mxu1 }
 0x24e   : > { %v1062_v31 = vpack.c.bf16 %v927_v25, %v927_v25  ;;  %v1065_v32 = vpack.c.bf16 %v992_v26, %v992_v26  ;;  %v1692_v33 = vpop.f32.mrb[15].mxu0  ;;  %v1700_v34 = vpop.f32.mrb[15].mxu1 }
 0x250   : > { %1554 = vst.msk [vmem:[%s2265_s28 + $0x8] sm:$0xf] %vm657_vm2, %v1062_v31  ;;  %1555 = vst.msk [vmem:[%s2270_s12 + $0x8] sm:$0xf] %vm657_vm2, %v1065_v32 }
 0x253   : > { %v1056_v37 = vpop.f32.mrb[16].mxu0  ;;  %v1130_v38 = vpop.f32.mrb[16].mxu1 }
 0x254   : > { %v1057_v39 = vadd.f32 %v1550_v35, %v1056_v37  ;;  %v1131_v40 = vadd.f32 %v1562_v36, %v1130_v38  ;;  %v1707_v41 = vpop.f32.mrb[17].mxu0  ;;  %v1715_v42 = vpop.f32.mrb[17].mxu1 }
 0x255   : > { %v1059_v43 = vpop.f32.mrb[18].mxu0  ;;  %v1133_v44 = vpop.f32.mrb[18].mxu1 }
 0x256   : > { %v1068_v45 = vpack.c.bf16 %v1057_v39, %v1057_v39  ;;  %v1266_v46 = vpack.c.bf16 %v1131_v40, %v1131_v40  ;;  %v1708_v47 = vpop.f32.mrb[19].mxu0  ;;  %v1716_v48 = vpop.f32.mrb[19].mxu1 }
 0x258   : > { %1556 = vst.msk [vmem:[%s2281_s23 + $0x8] sm:$0xf] %vm657_vm2, %v1068_v45  ;;  %1584 = vst.msk [vmem:[%s2265_s28 + $0xc] sm:$0xf] %vm657_vm2, %v1266_v46  ;;  %s1834_s28 = scalar_lea.vmem %s1833_s24, 512 }
 0x259   : > { %p1836_p2 = scmp.lt.s32.totalorder %s1834_s28, %s1828_s4 }
 0x25b   : > { %p1837_p3 = por %p1836_p2, %p1835_p1 }
 0x25d   : > { %p1838_p5 = pnand %p1837_p3, %p1831_p0 }
 0x25f   : > { %1841 = shalt.err (!%p1838_p5)
}
 0x260   : > { %s1842_s0 = scalar_lea.hbm %s2323_s26, 256  ;;  %s1846_s14 = scalar_lea.hbm %s2476_s9, 512 }
 0x261   : > { %p1843_p6 = scmp.ne.s32.totalorder %s2323_s26, %s1842_s0  ;;  %p1847_p10 = scmp.lt.u32.totalorder %s2323_s26, %s2476_s9 }
 0x262   : > { %p1848_p11 = scmp.lt.u32.totalorder %s1846_s14, %s1842_s0  ;;  %p1850_p13 = scmp.lt.u32.totalorder %s1842_s0, %s2323_s26 }
 0x263   : > { %p1844_p7 = pnand %p1843_p6, %p2077_p4 }
 0x264   : > { %p1849_p12 = por %p1848_p11, %p1847_p10 }
 0x265   : > { %p1845_p9 = pneg %p1844_p7 }
 0x266   : > { %p1851_p0 = por %p1850_p13, %p1849_p12 }
 0x268   : > { %p1852_p1 = pnand %p1851_p0, %p1845_p9 }
 0x26a   : > { %1855 = shalt.err (!%p1852_p1)
}
 0x26b   : > { %s2482_s4 = smov 64   ;;  %s2484_s24 = smov 4   ;;  %v1195_v51 = vpop.f32.mrb[20].mxu0  ;;  %v1260_v52 = vpop.f32.mrb[20].mxu1 }
 0x26c   : > { %1733 = dma.vmem_to_hbm [thread:$0]  (%p2077_p4), %s2317_s16, 256, %s2323_s26, %s2337_s3, %s2482_s4, %s2482_s4, %s2484_s24   ;;  %v1196_v53 = vadd.f32 %v1571_v49, %v1195_v51  ;;  %v1261_v54 = vadd.f32 %v1580_v50, %v1260_v52  ;;  %v1723_v55 = vpop.f32.mrb[21].mxu0  ;;  %v1731_v56 = vpop.f32.mrb[21].mxu1 }
 0x26d   : > { %s1317_s28 = sshll.u32 %s2270_s12, 4  ;;  %s2499_s0 = sadd.s32 4294967295, %s1966_s22   ;;  %v1198_v57 = vpop.f32.mrb[22].mxu0  ;;  %v1263_v58 = vpop.f32.mrb[22].mxu1  ;;  %s2370_s28 = int_to_ptr.vmem [resolvable:$true] %s1317_s28 }
 0x26e   : > { %s2367_s1 = sand.u32 1, %s2499_s0   ;;  %s1334_s2 = sshll.u32 %s2281_s23, 4  ;;  %v1269_v59 = vpack.c.bf16 %v1196_v53, %v1196_v53  ;;  %v1272_v60 = vpack.c.bf16 %v1261_v54, %v1261_v54  ;;  %v1724_v61 = vpop.f32.mrb[23].mxu0  ;;  %v1732_v62 = vpop.f32.mrb[23].mxu1  ;;  %s2378_s2 = int_to_ptr.vmem [resolvable:$true] %s1334_s2 }
 0x26f   : > { %s2376_s26 = scalar_lea.hbm %s2477_s10, %s2315_s13  ;;  %s2384_s20 = scalar_lea.hbm %s2478_s11, %s2315_s13 }
 0x270   : > { %1585 = vst.msk [vmem:[%s2270_s12 + $0xc] sm:$0xf] %vm657_vm2, %v1269_v59  ;;  %1586 = vst.msk [vmem:[%s2281_s23 + $0xc] sm:$0xf] %vm657_vm2, %v1272_v60  ;;  %s1281_s0 = scalar_lea.sflag [#allocation5], %s2367_s1  ;;  %s1856_s4 = scalar_lea.vmem %s2370_s28, 256 }
 0x271   : > { %p1857_p2 = scmp.ne.s32.totalorder %s2370_s28, %s1856_s4  ;;  %s1973_s3 = smov [#allocation4]  }
 0x272   : > { %s1860_s16 = sshll.u32 %s1973_s3, 4  ;;  %s1861_s16 = int_to_ptr.vmem [resolvable:$false] %s1860_s16 }
 0x273   : > { %p1858_p3 = pnand %p1857_p2, %p2077_p4  ;;  %s1862_s24 = scalar_lea.vmem %s1861_s16, 512 }
 0x274   : > { %p1863_p6 = scmp.lt.s32.totalorder %s2370_s28, %s1861_s16  ;;  %p1864_p7 = scmp.lt.s32.totalorder %s1862_s24, %s1856_s4 }
 0x275   : > { %p1859_p5 = pneg %p1858_p3 }
 0x276   : > { %p1865_p9 = por %p1864_p7, %p1863_p6 }
 0x278   : > { %p1866_p10 = pnand %p1865_p9, %p1859_p5 }
 0x27a   : > { %1869 = shalt.err (!%p1866_p10)
}
 0x27b   : > { %s1870_s23 = scalar_lea.hbm %s2376_s26, 256  ;;  %s1874_s14 = scalar_lea.hbm %s2477_s10, 512 }
 0x27c   : > { %p1871_p11 = scmp.ne.s32.totalorder %s2376_s26, %s1870_s23  ;;  %p1875_p0 = scmp.lt.u32.totalorder %s2376_s26, %s2477_s10 }
 0x27d   : > { %p1876_p1 = scmp.lt.u32.totalorder %s1874_s14, %s1870_s23  ;;  %p1878_p3 = scmp.lt.u32.totalorder %s1870_s23, %s2376_s26 }
 0x27e   : > { %p1872_p12 = pnand %p1871_p11, %p2077_p4 }
 0x27f   : > { %p1877_p2 = por %p1876_p1, %p1875_p0 }
 0x280   : > { %p1873_p13 = pneg %p1872_p12 }
 0x281   : > { %p1879_p5 = por %p1878_p3, %p1877_p2 }
 0x283   : > { %p1880_p6 = pnand %p1879_p5, %p1873_p13 }
 0x285   : > { %1883 = shalt.err (!%p1880_p6)
}
 0x286   : > { %s2500_s4 = smov 4   ;;  %s2501_s24 = smov 64  }
 0x287   : > { %1734 = dma.vmem_to_hbm [thread:$0]  (%p2077_p4), %s2370_s28, 256, %s2376_s26, %s1281_s0, %s2501_s24, %s2501_s24, %s2500_s4  }
 0x288   : > { %s1884_s16 = scalar_lea.vmem %s2378_s2, 256  ;;  %s1974_s23 = smov [#allocation6]  }
 0x289   : > { %p1885_p7 = scmp.ne.s32.totalorder %s2378_s2, %s1884_s16  ;;  %s1888_s13 = sshll.u32 %s1974_s23, 4  ;;  %s1889_s13 = int_to_ptr.vmem [resolvable:$false] %s1888_s13 }
 0x28a   : > { %s1890_s12 = scalar_lea.vmem %s1889_s13, 512  ;;  %p1891_p11 = scmp.lt.s32.totalorder %s2378_s2, %s1889_s13 }
 0x28b   : > { %p1886_p9 = pnand %p1885_p7, %p2077_p4  ;;  %p1892_p12 = scmp.lt.s32.totalorder %s1890_s12, %s1884_s16 }
 0x28d   : > { %p1887_p10 = pneg %p1886_p9  ;;  %p1893_p13 = por %p1892_p12, %p1891_p11 }
 0x28f   : > { %p1894_p0 = pnand %p1893_p13, %p1887_p10 }
 0x291   : > { %1897 = shalt.err (!%p1894_p0)
}
 0x292   : > { %s1898_s28 = scalar_lea.hbm %s2384_s20, 256  ;;  %s1902_s15 = scalar_lea.hbm %s2478_s11, 512 }
 0x293   : > { %p1899_p1 = scmp.ne.s32.totalorder %s2384_s20, %s1898_s28  ;;  %p1903_p5 = scmp.lt.u32.totalorder %s2384_s20, %s2478_s11 }
 0x294   : > { %p1904_p6 = scmp.lt.u32.totalorder %s1902_s15, %s1898_s28  ;;  %p1906_p9 = scmp.lt.u32.totalorder %s1898_s28, %s2384_s20 }
 0x295   : > { %p1900_p2 = pnand %p1899_p1, %p2077_p4 }
 0x296   : > { %p1905_p7 = por %p1904_p6, %p1903_p5 }
 0x297   : > { %p1901_p3 = pneg %p1900_p2 }
 0x298   : > { %p1907_p10 = por %p1906_p9, %p1905_p7 }
 0x29a   : > { %p1908_p11 = pnand %p1907_p10, %p1901_p3 }
 0x29c   : > { %1911 = shalt.err (!%p1908_p11)
}
 0x29d   : > { %1735 = dma.vmem_to_hbm [thread:$0]  (%p2077_p4), %s2378_s2, 256, %s2384_s20, %s1281_s0, %s2501_s24, %s2501_s24, %s2500_s4  }
 0x29e PF: > { %p1749_p12 = scmp.ge.s32.totalorder %s1966_s22, 2  ;;  %s1349_s16 = sand.u32 1, %s1946_s17  }
 0x29f   : > { %s1350_s13 = scalar_lea.sflag [#allocation3], %s1349_s16 }
 0x2a0   : > { %p1740_p13 = pnand %p1749_p12, %p2086_p8 }
 0x2a2   : > { %1937 = dma.done.wait (!%p1740_p13), %s1350_s13, 256  }
 0x2a3   : > { %1939 = vsyncadd (!%p1740_p13), %s1350_s13, 4294967040  ;;  %s2502_s27 = sadd.s32 4294967294, %s1966_s22  }
 0x2a4   : > { %s1358_s12 = sand.u32 1, %s2502_s27  }
 0x2a5   : > { %s1359_s28 = scalar_lea.sflag [#allocation5], %s1358_s12 }
 0x2a6   : > { %1941 = dma.done.wait (!%p1740_p13), %s1359_s28, 512  }
 0x2a7   : > { %1943 = vsyncadd (!%p1740_p13), %s1359_s28, 4294966784  ;;  %s28_s22 = sadd.s32 1, %s1966_s22   ;;  %s2503_s17 = smov %s1950_s18 }
 0x2a8   : > { %p25_p4 = scmp.ge.s32.totalorder %s28_s22, 4   ;;  %s2504_s18 = smov %s1954_s19 }
 0x2a9   : > { %s2505_s19 = smov %s2092_s30  ;;  %s2506_s20 = smov %s1962_s21 }
 0x2aa   : > { %s2507_s21 = smov %s2509_s25  ;;  %27 = sbr.rel (!%p25_p4) target bundleno = 12 (0xc), region = 150 }
 0x2b1   :  { %1373 = vsyncpa [#allocation3], 1 }
 0x2b2   :  { %1375 = vsyncpa [#allocation3 + $0x1], 1 }
 0x2b3   :  { %1376 = vsyncpa [#allocation5], 1 }
 0x2b4   :  { %1378 = vsyncpa [#allocation5 + $0x1], 1 }

</bundles_post_ra>
